<compile_context>
chip_gen: v7x
topology: tpu7x:2x2x1
jax: 0.10.0
libtpu: 0.0.40
codegen_flags: <defaults>
</compile_context>

<pallas_src>
import jax
import jax.numpy as jnp
from jax.experimental import pallas as pl
from jax.experimental.pallas import tpu as pltpu


def _round_up(x, m):
    return ((x + m - 1) // m) * m


# ----------------------------------------------------------------------------
# Pass 1: conv-transpose matmul + per-tile partial stats (Y is NOT written out).
# ----------------------------------------------------------------------------
def stats_kernel(x_ref, wt_ref, sum_ref, sq_ref):
    x = x_ref[0]                                                        # (C_in, hw_block)
    y = jnp.dot(wt_ref[...], x, preferred_element_type=jnp.float32)    # (C4, hw_block)
    sum_ref[0, 0, :, :] = jnp.sum(y, axis=1, keepdims=True)            # (C4, 1)
    sq_ref[0, 0, :, :] = jnp.sum(y * y, axis=1, keepdims=True)         # (C4, 1)


# ----------------------------------------------------------------------------
# Pass 2: recompute matmul + fused BatchNorm affine + LeakyReLU(0.2).
# ----------------------------------------------------------------------------
def convt_bn_lrelu_kernel(x_ref, wt_ref, scale_ref, bias_ref, o_ref):
    x = x_ref[0]                                                        # (C_in, hw_block)
    y = jnp.dot(wt_ref[...], x, preferred_element_type=jnp.float32)    # (C4, hw_block)
    z = y * scale_ref[...] + bias_ref[...]                              # (C4,1) broadcast
    o_ref[0] = jnp.where(z >= 0, z, 0.2 * z)


def transpose_conv_block(x, weight, gamma, beta, *, eps=1e-5, tile_hw=512):
    """x: (N, C_in, H, W) f32, weight: (C_in, C_out, 2, 2), gamma/beta: (C_out,)."""
    N, C_in, H, W = x.shape
    C_out = weight.shape[1]
    C4 = C_out * 4
    HW = H * W
    M = N * HW

    # Free reshapes only (no layout transpose of x).
    x3 = x.reshape(N, C_in, HW).astype(jnp.float32)          # (N, C_in, HW)
    wt = weight.reshape(C_in, C4).T.astype(jnp.float32)      # (C4, C_in); row = co*4+kh*2+kw

    # Lane-dense spatial tile, sized to minimize padding (multiple of 128).
    n_hw = pl.cdiv(HW, tile_hw)
    hw_block = _round_up(pl.cdiv(HW, n_hw), 128)
    hw_pad = n_hw * hw_block
    if hw_pad != HW:
        # zero columns contribute nothing to the stats sums
        x3 = jnp.pad(x3, ((0, 0), (0, 0), (0, hw_pad - HW)))

    cparams = pltpu.CompilerParams(
        dimension_semantics=("parallel", "parallel"),   # no serialized accumulator axis
        vmem_limit_bytes=32 * 1024 * 1024,              # safe on v5e/v6e/v7x; tiles are small
    )

    # -------- pass 1: per-tile partial statistics --------
    part_sum, part_sq = pl.pallas_call(
        stats_kernel,
        out_shape=(
            jax.ShapeDtypeStruct((N, n_hw, C4, 1), jnp.float32),
            jax.ShapeDtypeStruct((N, n_hw, C4, 1), jnp.float32),
        ),
        grid_spec=pltpu.PrefetchScalarGridSpec(
            num_scalar_prefetch=0,
            grid=(N, n_hw),
            in_specs=[
                pl.BlockSpec((1, C_in, hw_block), lambda n, j: (n, 0, j)),
                pl.BlockSpec((C4, C_in), lambda n, j: (0, 0)),
            ],
            out_specs=[
                pl.BlockSpec((1, 1, C4, 1), lambda n, j: (n, j, 0, 0)),
                pl.BlockSpec((1, 1, C4, 1), lambda n, j: (n, j, 0, 0)),
            ],
        ),
        compiler_params=cparams,
    )(x3, wt)

    # -------- scalar glue: batch statistics -> per-row scale/bias --------
    count = jnp.float32(4 * M)                                # N * 2H * 2W per channel
    ch_sum = part_sum.sum(axis=(0, 1, 3)).reshape(C_out, 4).sum(axis=1)
    ch_sq = part_sq.sum(axis=(0, 1, 3)).reshape(C_out, 4).sum(axis=1)
    mean = ch_sum / count
    var = jnp.maximum(ch_sq / count - mean * mean, 0.0)       # biased var, clamp >= 0
    inv_std = jax.lax.rsqrt(var + eps)
    scale_c = gamma.astype(jnp.float32) * inv_std
    bias_c = beta.astype(jnp.float32) - mean * scale_c
    scale = jnp.repeat(scale_c, 4).reshape(C4, 1)             # per (co, kh, kw) row
    bias = jnp.repeat(bias_c, 4).reshape(C4, 1)

    # -------- pass 2: recompute conv-transpose + BN affine + LeakyReLU --------
    out_t = pl.pallas_call(
        convt_bn_lrelu_kernel,
        out_shape=jax.ShapeDtypeStruct((N, C4, hw_pad), jnp.float32),
        grid_spec=pltpu.PrefetchScalarGridSpec(
            num_scalar_prefetch=0,
            grid=(N, n_hw),
            in_specs=[
                pl.BlockSpec((1, C_in, hw_block), lambda n, j: (n, 0, j)),
                pl.BlockSpec((C4, C_in), lambda n, j: (0, 0)),
                pl.BlockSpec((C4, 1), lambda n, j: (0, 0)),
                pl.BlockSpec((C4, 1), lambda n, j: (0, 0)),
            ],
            out_specs=pl.BlockSpec((1, C4, hw_block), lambda n, j: (n, 0, j)),
        ),
        compiler_params=cparams,
    )(x3, wt, scale, bias)

    # (N, C4, hw_pad) -> (N, C_out, 2, 2, H, W) -> (N, C_out, 2H, 2W)
    y = out_t[:, :, :HW] if hw_pad != HW else out_t
    y = y.reshape(N, C_out, 2, 2, H, W)
    out = jnp.transpose(y, (0, 1, 4, 2, 5, 3)).reshape(N, C_out, 2 * H, 2 * W)
    return out


# ----------------------------------------------------------------------------
# Pure-JAX reference (same math as the PyTorch module in default training mode).
# ----------------------------------------------------------------------------
def reference(x, weight, gamma, beta, eps=1e-5):
    N, C_in, H, W = x.shape
    C_out = weight.shape[1]
    y = jnp.einsum("nihw,iokl->nohkwl", x, weight).reshape(N, C_out, 2 * H, 2 * W)
    mean = y.mean(axis=(0, 2, 3), keepdims=True)
    var = ((y - mean) ** 2).mean(axis=(0, 2, 3), keepdims=True)
    z = (y - mean) / jnp.sqrt(var + eps)
    z = z * gamma[None, :, None, None] + beta[None, :, None, None]
    return jnp.where(z >= 0, z, 0.2 * z)


if __name__ == "__main__":
    key = jax.random.PRNGKey(0)
    k1, k2, k3, k4 = jax.random.split(key, 4)

    N, C_in, C_out, H, W = 2, 4, 8, 16, 16
    x = jax.random.normal(k1, (N, C_in, H, W), dtype=jnp.float32)
    weight = jax.random.normal(k2, (C_in, C_out, 2, 2), dtype=jnp.float32) * 0.1
    gamma = 1.0 + 0.1 * jax.random.normal(k3, (C_out,), dtype=jnp.float32)
    beta = 0.1 * jax.random.normal(k4, (C_out,), dtype=jnp.float32)

    out = jax.block_until_ready(transpose_conv_block(x, weight, gamma, beta))
    ref = jax.block_until_ready(reference(x, weight, gamma, beta))

    assert out.shape == (N, C_out, 2 * H, 2 * W), out.shape
    assert jnp.allclose(out, ref, rtol=1e-4, atol=1e-4), float(jnp.max(jnp.abs(out - ref)))

    print("KERNEL_OK")
</pallas_src>

<mosaic_0001>
module attributes {stable_mosaic.version = 11 : i64} {
  func.func @stats_kernel(%arg0: i32, %arg1: i32, %arg2: memref<1x4x256xf32, #tpu.memory_space<vmem>>, %arg3: memref<32x4xf32, #tpu.memory_space<vmem>>, %arg4: memref<1x1x32x1xf32, #tpu.memory_space<vmem>>, %arg5: memref<1x1x32x1xf32, #tpu.memory_space<vmem>>) attributes {dimension_semantics = [#tpu.dimension_semantics<parallel>, #tpu.dimension_semantics<parallel>], iteration_bounds = array<i64: 2, 1>, scalar_prefetch = 0 : i64, scratch_operands = 0 : i64, tpu.core_type = #tpu.core_type<tc>, window_params = [{transform_indices = @transform_0, window_bounds = array<i64: 1, 4, 256>}, {pipeline_mode = #tpu.pipeline_mode<synchronous>, transform_indices = @transform_1, window_bounds = array<i64: 32, 4>}, {transform_indices = @transform_2, window_bounds = array<i64: 1, 1, 32, 1>}, {transform_indices = @transform_3, window_bounds = array<i64: 1, 1, 32, 1>}]} {
    %c0 = arith.constant 0 : index
    %c0_0 = arith.constant 0 : index
    %c0_1 = arith.constant 0 : index
    %0 = vector.load %arg2[%c0, %c0_0, %c0_1] : memref<1x4x256xf32, #tpu.memory_space<vmem>>, vector<1x4x256xf32>
    %1 = vector.shape_cast %0 : vector<1x4x256xf32> to vector<4x256xf32>
    %c0_2 = arith.constant 0 : index
    %c0_3 = arith.constant 0 : index
    %2 = vector.load %arg3[%c0_2, %c0_3] : memref<32x4xf32, #tpu.memory_space<vmem>>, vector<32x4xf32>
    %cst = arith.constant dense<0.000000e+00> : vector<32x256xf32>
    %3 = tpu.matmul %2, %1, %cst {dimension_numbers = #tpu.dot_dimension_numbers<[1], [0], [0], [1], [0, 0, 1, 1], [], []>} : vector<32x4xf32>, vector<4x256xf32>, vector<32x256xf32> -> vector<32x256xf32>
    %cst_4 = arith.constant dense<0.000000e+00> : vector<32xf32>
    %4 = vector.multi_reduction <add>, %3, %cst_4 [1] : vector<32x256xf32> to vector<32xf32>
    %5 = vector.shape_cast %4 : vector<32xf32> to vector<32x1xf32>
    %c0_5 = arith.constant 0 : index
    %c0_6 = arith.constant 0 : index
    %c0_7 = arith.constant 0 : index
    %c0_8 = arith.constant 0 : index
    %6 = vector.load %arg4[%c0_5, %c0_6, %c0_7, %c0_8] : memref<1x1x32x1xf32, #tpu.memory_space<vmem>>, vector<1x1x32x1xf32>
    %7 = vector.shape_cast %6 : vector<1x1x32x1xf32> to vector<32x1xf32>
    %8 = vector.shape_cast %5 : vector<32x1xf32> to vector<1x1x32x1xf32>
    tpu.vector_store %arg4[%c0_5, %c0_6, %c0_7, %c0_8], %8 {strides = array<i32>} : memref<1x1x32x1xf32, #tpu.memory_space<vmem>>, vector<1x1x32x1xf32>,
    %9 = arith.mulf %3, %3 : vector<32x256xf32>
    %cst_9 = arith.constant dense<0.000000e+00> : vector<32xf32>
    %10 = vector.multi_reduction <add>, %9, %cst_9 [1] : vector<32x256xf32> to vector<32xf32>
    %11 = vector.shape_cast %10 : vector<32xf32> to vector<32x1xf32>
    %c0_10 = arith.constant 0 : index
    %c0_11 = arith.constant 0 : index
    %c0_12 = arith.constant 0 : index
    %c0_13 = arith.constant 0 : index
    %12 = vector.load %arg5[%c0_10, %c0_11, %c0_12, %c0_13] : memref<1x1x32x1xf32, #tpu.memory_space<vmem>>, vector<1x1x32x1xf32>
    %13 = vector.shape_cast %12 : vector<1x1x32x1xf32> to vector<32x1xf32>
    %14 = vector.shape_cast %11 : vector<32x1xf32> to vector<1x1x32x1xf32>
    tpu.vector_store %arg5[%c0_10, %c0_11, %c0_12, %c0_13], %14 {strides = array<i32>} : memref<1x1x32x1xf32, #tpu.memory_space<vmem>>, vector<1x1x32x1xf32>,
    return
  }
  func.func @transform_0(%arg0: i32, %arg1: i32) -> (i32, i32, i32) {
    %c0_i32 = arith.constant 0 : i32
    %c0_i32_0 = arith.constant 0 : i32
    return %arg0, %c0_i32, %arg1 : i32, i32, i32
  }
  func.func @transform_1(%arg0: i32, %arg1: i32) -> (i32, i32) {
    %c0_i32 = arith.constant 0 : i32
    %c0_i32_0 = arith.constant 0 : i32
    %c0_i32_1 = arith.constant 0 : i32
    return %c0_i32, %c0_i32_0 : i32, i32
  }
  func.func @transform_2(%arg0: i32, %arg1: i32) -> (i32, i32, i32, i32) {
    %c0_i32 = arith.constant 0 : i32
    %c0_i32_0 = arith.constant 0 : i32
    %c0_i32_1 = arith.constant 0 : i32
    return %arg0, %arg1, %c0_i32, %c0_i32_0 : i32, i32, i32, i32
  }
  func.func @transform_3(%arg0: i32, %arg1: i32) -> (i32, i32, i32, i32) {
    %c0_i32 = arith.constant 0 : i32
    %c0_i32_0 = arith.constant 0 : i32
    %c0_i32_1 = arith.constant 0 : i32
    return %arg0, %arg1, %c0_i32, %c0_i32_0 : i32, i32, i32, i32
  }
}

</mosaic_0001>

<bundles_post_ra>
// kernel: tpu_custom_call.1
= control target key start
LH: loop header
LB: loop body
LE: loop exit
PB: predicated region body
PF: predicated region fallthrough
CT: control target
= control target key end

     0   :  { %s624_s12 = smov 0   ;;  %s626_s13 = smov 0   ;;  %s684_s0 = inlined_call_operand.vmem [shape: f32[2,4,256], index: 0, kind: input, shape index: {}]   ;;  %s685_s1 = inlined_call_operand.vmem [shape: f32[32,4], index: 1, kind: input, shape index: {}]   ;;  %s686_s2 = inlined_call_operand.vmem [shape: f32[2,1,32,1], index: 2, kind: output, shape index: {0}]   ;;  %s687_s3 = inlined_call_operand.vmem [shape: f32[2,1,32,1], index: 3, kind: output, shape index: {1}]  }
   0x1   :  { %s628_s14 = smov 0  }
   0x2 LB: > { %s26_s15 = sadd.s32 1, %s597_s13  ;;  %p533_p0 = scmp.ge.s32.totalorder %s601_s14, 1  ;;  %s601_s14 = sphi %s628_s14, %s14_s14   ;;  %s597_s13 = sphi %s626_s13, %s689_s13   ;;  %s593_s12 = sphi %s624_s12, %s688_s12  }
   0x3   : > { %p28_p1 = scmp.ge.s32.totalorder %s26_s15, 2  ;;  %p163_p2 = scmp.lt.s32.totalorder %s601_s14, 3 }
   0x5   : > { %s691_s15 = smov (%p28_p1, %s26_s15), 0  ;;  %p164_p3 = pnand %p533_p0, %p163_p2 }
   0x6   : > { %p205_p4 = scmp.lt.s32.totalorder (!%p164_p3), %s593_s12, 1  ;;  %v603_v0 = vmov (!%p164_p3), 0.0   ;;  %vm252_vm0 = vcmask (!%p164_p3), 1043456   ;;  %v233_v3 = vld [vmem:[%s685_s1] sm:$0xff] (!%p164_p3)  ;;  %vm239_vm1 = vcmask (!%p164_p3), 31744   ;;  %v235_v4 = vld [vmem:[%s685_s1 + $0x10] sm:$0xff] (!%p164_p3) }
   0x7   : > { %167 = sbr.rel (%p164_p3) target bundleno = 392 (0x188), region = 28  ;;  %321 = vmatprep.mubr.f32.mxu0 (!%p164_p3), %v603_v0  ;;  %333 = vmatprep.mubr.f32.mxu1 (!%p164_p3), %v603_v0  ;;  %v236_v5 = vld [vmem:[%s685_s1 + $0x18] sm:$0xff] (!%p164_p3)  ;;  %v234_v6 = vld [vmem:[%s685_s1 + $0x8] sm:$0xff] (!%p164_p3)  ;;  %vm358_vm2 = vcmask (!%p164_p3), 7168  }
   0xe   : > { %s693_s12 = smov (!%p205_p4, %s593_s12), 1 }
   0xf   : > { %s548_s16 = sshll.u32 %s693_s12, 3  ;;  %s549_s28 = sshll.u32 %s693_s12, 5 }
  0x10   : > { %s212_s19 = scalar_lea.vmem %s684_s0, %s548_s16  ;;  %s222_s4 = scalar_lea.vmem %s686_s2, %s549_s28 }
  0x11   : > { %v232_v1 = vld [vmem:[%s212_s19] sm:$0xff]  ;;  %s231_s7 = scalar_lea.vmem %s687_s3, %s549_s28 }
  0x12   : > { %v238_v2 = vcombine.high %v232_v1, %v232_v1 }
  0x14   : > { %540 = vmatprep.subr.msk.mxu0 %vm252_vm0, %v238_v2  ;;  %551 = vmatprep.subr.msk.mxu1 %vm252_vm0, %v238_v2 }
  0x15   : > { %541 = vmatpush1.msk.msra.mxu0 %vm252_vm0, %v232_v1  ;;  %552 = vmatpush1.msk.msra.mxu1 %vm252_vm0, %v232_v1 }
  0x16   : > { %542 = vmatmul.mubr.msk.f32.vlgmr.msra.gmra.mrb[0].mxu0 %vm239_vm1, %v233_v3  ;;  %544 = vmatmul.mubr.msk.f32.vlgmr.msra.gmra.mrb[0].mxu1 %vm239_vm1, %v235_v4 }
  0x17   : > { %339 = vmatprep.mubr.f32.mxu1 %v603_v0  ;;  %327 = vmatprep.mubr.f32.mxu0 %v603_v0 }
  0x1a   : > { %545 = vmatmul.mubr.msk.f32.gmra.mrb[2].mxu1 %vm239_vm1, %v236_v5  ;;  %543 = vmatmul.mubr.msk.f32.gmra.mrb[2].mxu0 %vm239_vm1, %v234_v6 }
  0xe9   : > { %v323_v7 = vpop.f32.mrb[0].mxu0  ;;  %v335_v8 = vpop.f32.mrb[0].mxu1 }
  0xea   : > { %v363_v9 = vmul.f32 %v323_v7, %v323_v7  ;;  %v367_v10 = vmul.f32 %v335_v8, %v335_v8  ;;  %v325_v11 = vpop.f32.mrb[1].mxu0  ;;  %v337_v12 = vpop.f32.mrb[1].mxu1 }
  0xeb   : > { %v364_v13 = vmul.f32 %v325_v11, %v325_v11  ;;  %v368_v14 = vmul.f32 %v337_v12, %v337_v12  ;;  %v352_v15 = vadd.f32 %v337_v12, %v335_v8  ;;  %v346_v16 = vadd.f32 %v325_v11, %v323_v7 }
  0xed   : > { %353 = vadd.xlane.f32.xlu1 %v352_v15  ;;  %v341_v17 = vpop.f32.mrb[2].mxu1  ;;  %347 = vadd.xlane.f32.xlu0 %v346_v16  ;;  %v329_v18 = vpop.f32.mrb[2].mxu0  ;;  %v371_v19 = vadd.f32 %v364_v13, %v363_v9  ;;  %v377_v20 = vadd.f32 %v368_v14, %v367_v10 }
  0xee   : > { %v369_v21 = vmul.f32 %v341_v17, %v341_v17  ;;  %v365_v22 = vmul.f32 %v329_v18, %v329_v18  ;;  %v343_v23 = vpop.f32.mrb[3].mxu1  ;;  %v331_v24 = vpop.f32.mrb[3].mxu0 }
  0xef   : > { %v355_v25 = vadd.f32 %v343_v23, %v341_v17  ;;  %v370_v26 = vmul.f32 %v343_v23, %v343_v23  ;;  %v349_v27 = vadd.f32 %v331_v24, %v329_v18  ;;  %v366_v28 = vmul.f32 %v331_v24, %v331_v24 }
  0xf1   : > { %356 = vadd.xlane.f32.xlu1 %v355_v25  ;;  %372 = vadd.xlane.f32.xlu0 %v371_v19  ;;  %v374_v29 = vadd.f32 %v366_v28, %v365_v22  ;;  %v380_v30 = vadd.f32 %v370_v26, %v369_v21 }
  0xf5   : > { %375 = vadd.xlane.f32.xlu1 %v374_v29  ;;  %350 = vadd.xlane.f32.xlu0 %v349_v27 }
  0xf9   : > { %381 = vadd.xlane.f32.xlu1 %v380_v30  ;;  %378 = vadd.xlane.f32.xlu0 %v377_v20 }
 0x17a   : > { %v354_v31 = vpop.xlane.xlu1 %353  ;;  %v348_v32 = vpop.xlane.xlu0 %347 }
 0x17b   : > { %361 = vst.msk [vmem:[%s222_s4 + $0x10] sm:$0xff] %vm358_vm2, %v354_v31  ;;  %359 = vst.msk [vmem:[%s222_s4] sm:$0xff] %vm358_vm2, %v348_v32 }
 0x17e   : > { %v357_v33 = vpop.xlane.xlu1 %356  ;;  %v373_v34 = vpop.xlane.xlu0 %372 }
 0x17f   : > { %362 = vst.msk [vmem:[%s222_s4 + $0x18] sm:$0xff] %vm358_vm2, %v357_v33  ;;  %383 = vst.msk [vmem:[%s231_s7] sm:$0xff] %vm358_vm2, %v373_v34 }
 0x182   : > { %v376_v35 = vpop.xlane.xlu1 %375  ;;  %v351_v36 = vpop.xlane.xlu0 %350 }
 0x183   : > { %384 = vst.msk [vmem:[%s231_s7 + $0x8] sm:$0xff] %vm358_vm2, %v376_v35  ;;  %360 = vst.msk [vmem:[%s222_s4 + $0x8] sm:$0xff] %vm358_vm2, %v351_v36 }
 0x186   : > { %v382_v37 = vpop.xlane.xlu1 %381  ;;  %v379_v38 = vpop.xlane.xlu0 %378 }
 0x187   : > { %386 = vst.msk [vmem:[%s231_s7 + $0x18] sm:$0xff] %vm358_vm2, %v382_v37  ;;  %385 = vst.msk [vmem:[%s231_s7 + $0x10] sm:$0xff] %vm358_vm2, %v379_v38 }
 0x188 PF: > { %s14_s14 = sadd.s32 1, %s601_s14   ;;  %s688_s12 = smov %s597_s13 }
 0x189   : > { %p11_p5 = scmp.ge.s32.totalorder %s14_s14, 4   ;;  %s689_s13 = smov %s691_s15 }
 0x18b   :  { %13 = sbr.rel (!%p11_p5) target bundleno = 2 (0x2), region = 70 }

</bundles_post_ra>
